<compile_context>
chip_gen: v6e
topology: v6e:2x2x1
jax: 0.10.0
libtpu: 0.0.40
codegen_flags: <defaults>
</compile_context>

<pallas_src>
import functools
import math

import jax
import jax.numpy as jnp
from jax.experimental import pallas as pl
from jax.experimental.pallas import tpu as pltpu


def _round_up(x, m):
    return (x + m - 1) // m * m


def _q_mlp_kernel(xT_ref, w1_ref, b1_ref, w2_ref, b2_ref, w3_ref, b3_ref, oT_ref):
    xT = xT_ref[...]                     # (S, TB)   f32, batch on lanes
    w1 = w1_ref[...]                     # (H, S)    PyTorch layout (out, in)
    hidden, state_dim = w1.shape
    tb = xT.shape[1]

    # ---- fc1 + ReLU ----
    # Tiny contraction dim (state_dim ~ 4): statically-unrolled VPU FMA keeps
    # the MXU free; fall back to the MXU for larger state dims.
    if state_dim <= 16:
        h1 = jnp.broadcast_to(b1_ref[...], (hidden, tb)).astype(jnp.float32)
        for k in range(state_dim):       # static unroll
            h1 = h1 + w1[:, k:k + 1] * xT[k:k + 1, :]
    else:
        h1 = jnp.dot(w1, xT, preferred_element_type=jnp.float32) + b1_ref[...]
    h1 = jnp.maximum(h1, 0.0)            # (H, TB)

    # ---- fc2 + ReLU (MXU, 128x128 contraction) ----
    h2 = jnp.dot(w2_ref[...], h1, preferred_element_type=jnp.float32)
    h2 = jnp.maximum(h2 + b2_ref[...], 0.0)          # (H, TB)

    # ---- fc3 (MXU, only action_pad=8 output sublanes) ----
    out = jnp.dot(w3_ref[...], h2, preferred_element_type=jnp.float32)
    oT_ref[...] = (out + b3_ref[...]).astype(oT_ref.dtype)   # (A_pad, TB)


@functools.partial(jax.jit, static_argnames=("block_batch",))
def q_forward(x, w1, b1, w2, b2, w3, b3, block_batch=512):
    """x: (batch, state_dim); weights in PyTorch layout W:(out,in), b:(out,1)."""
    batch, state_dim = x.shape
    action_num = w3.shape[0]

    # Pad the action (sublane) dim up to a multiple of 8.
    a_pad = _round_up(action_num, 8)
    if a_pad != action_num:
        w3 = jnp.pad(w3, ((0, a_pad - action_num), (0, 0)))
        b3 = jnp.pad(b3, ((0, a_pad - action_num), (0, 0)))

    # Batch on lanes: tile must be a multiple of 128 lanes.
    padded_batch = _round_up(batch, 128)
    tb = min(_round_up(block_batch, 128), padded_batch)
    padded_batch = _round_up(padded_batch, tb)

    xT = x.T                                             # (S, batch), lane-dense
    if padded_batch != batch:
        xT = jnp.pad(xT, ((0, 0), (0, padded_batch - batch)))
    grid = (padded_batch // tb,)

    # Weights/biases: constant block index -> VMEM-resident across grid steps.
    def resident(a):
        return pl.BlockSpec(a.shape, lambda i: (0,) * a.ndim)

    outT = pl.pallas_call(
        _q_mlp_kernel,
        out_shape=jax.ShapeDtypeStruct((a_pad, padded_batch), jnp.float32),
        grid=grid,
        in_specs=[
            pl.BlockSpec((state_dim, tb), lambda i: (0, i)),   # x^T tiled on batch
            resident(w1),
            resident(b1),
            resident(w2),
            resident(b2),
            resident(w3),
            resident(b3),
        ],
        out_specs=pl.BlockSpec((a_pad, tb), lambda i: (0, i)),
        compiler_params=pltpu.CompilerParams(
            dimension_semantics=("parallel",)),
    )(xT, w1, b1, w2, b2, w3, b3)

    return outT[:action_num, :batch].T                   # (batch, action_num)


def init_linear_params(key, in_features, out_features):
    """Deterministic init mimicking torch.nn.Linear defaults (uniform +/- 1/sqrt(in)).

    Weight is stored in the PyTorch layout (out_features, in_features); bias is
    stored as (out_features, 1) for lane broadcasting in the kernel.
    """
    kw, kb = jax.random.split(key)
    bound = 1.0 / math.sqrt(in_features)
    w = jax.random.uniform(kw, (out_features, in_features),
                           minval=-bound, maxval=bound, dtype=jnp.float32)
    b = jax.random.uniform(kb, (out_features, 1),
                           minval=-bound, maxval=bound, dtype=jnp.float32)
    return w, b


def q_forward_ref(x, w1, b1, w2, b2, w3, b3):
    h1 = jnp.maximum(x @ w1.T + b1.T, 0.0)
    h2 = jnp.maximum(h1 @ w2.T + b2.T, 0.0)
    return h2 @ w3.T + b3.T


if __name__ == "__main__":
    # Shapes consistent with the module: state_dim=4 (e.g. CartPole),
    # action_num=2, hidden_size=128 (module default).
    state_dim, action_num, hidden_size = 4, 2, 128

    key = jax.random.PRNGKey(0)
    kx, k1, k2, k3 = jax.random.split(key, 4)

    w1, b1 = init_linear_params(k1, state_dim, hidden_size)
    w2, b2 = init_linear_params(k2, hidden_size, hidden_size)
    w3, b3 = init_linear_params(k3, hidden_size, action_num)

    # Test 1: small ragged batch, single grid step (batch padded 37 -> 128).
    batch = 37
    x = jax.random.normal(kx, (batch, state_dim), dtype=jnp.float32)
    out = jax.block_until_ready(q_forward(x, w1, b1, w2, b2, w3, b3))
    ref = q_forward_ref(x, w1, b1, w2, b2, w3, b3)
    assert out.shape == (batch, action_num)
    assert jnp.allclose(out, ref, atol=1e-5, rtol=1e-5), "mismatch vs JAX reference (test 1)"

    # Test 2: larger ragged batch with a multi-step batch grid (tb=128, 3 steps).
    batch2 = 300
    x2 = jax.random.normal(jax.random.PRNGKey(1), (batch2, state_dim), dtype=jnp.float32)
    out2 = jax.block_until_ready(q_forward(x2, w1, b1, w2, b2, w3, b3, block_batch=128))
    ref2 = q_forward_ref(x2, w1, b1, w2, b2, w3, b3)
    assert out2.shape == (batch2, action_num)
    assert jnp.allclose(out2, ref2, atol=1e-5, rtol=1e-5), "mismatch vs JAX reference (test 2)"

    print("KERNEL_OK")
</pallas_src>

<mosaic_0001>
module attributes {stable_mosaic.version = 11 : i64} {
  func.func @_q_mlp_kernel(%arg0: i32, %arg1: memref<4x128xf32, #tpu.memory_space<vmem>>, %arg2: memref<128x4xf32, #tpu.memory_space<vmem>>, %arg3: memref<128x1xf32, #tpu.memory_space<vmem>>, %arg4: memref<128x128xf32, #tpu.memory_space<vmem>>, %arg5: memref<128x1xf32, #tpu.memory_space<vmem>>, %arg6: memref<8x128xf32, #tpu.memory_space<vmem>>, %arg7: memref<8x1xf32, #tpu.memory_space<vmem>>, %arg8: memref<8x128xf32, #tpu.memory_space<vmem>>) attributes {dimension_semantics = [#tpu.dimension_semantics<parallel>], iteration_bounds = array<i64: 1>, scalar_prefetch = 0 : i64, scratch_operands = 0 : i64, tpu.core_type = #tpu.core_type<tc>, window_params = [{transform_indices = @transform_0, window_bounds = array<i64: 4, 128>}, {pipeline_mode = #tpu.pipeline_mode<synchronous>, transform_indices = @transform_1, window_bounds = array<i64: 128, 4>}, {pipeline_mode = #tpu.pipeline_mode<synchronous>, transform_indices = @transform_2, window_bounds = array<i64: 128, 1>}, {pipeline_mode = #tpu.pipeline_mode<synchronous>, transform_indices = @transform_3, window_bounds = array<i64: 128, 128>}, {pipeline_mode = #tpu.pipeline_mode<synchronous>, transform_indices = @transform_4, window_bounds = array<i64: 128, 1>}, {pipeline_mode = #tpu.pipeline_mode<synchronous>, transform_indices = @transform_5, window_bounds = array<i64: 8, 128>}, {pipeline_mode = #tpu.pipeline_mode<synchronous>, transform_indices = @transform_6, window_bounds = array<i64: 8, 1>}, {transform_indices = @transform_7, window_bounds = array<i64: 8, 128>}]} {
    %c0 = arith.constant 0 : index
    %c0_0 = arith.constant 0 : index
    %0 = vector.load %arg1[%c0, %c0_0] : memref<4x128xf32, #tpu.memory_space<vmem>>, vector<4x128xf32>
    %c0_1 = arith.constant 0 : index
    %c0_2 = arith.constant 0 : index
    %1 = vector.load %arg2[%c0_1, %c0_2] : memref<128x4xf32, #tpu.memory_space<vmem>>, vector<128x4xf32>
    %c0_3 = arith.constant 0 : index
    %c0_4 = arith.constant 0 : index
    %2 = vector.load %arg3[%c0_3, %c0_4] : memref<128x1xf32, #tpu.memory_space<vmem>>, vector<128x1xf32>
    %3 = vector.shape_cast %2 : vector<128x1xf32> to vector<128x1xf32>
    %4 = vector.broadcast %3 : vector<128x1xf32> to vector<128x128xf32>
    %5 = vector.extract_strided_slice %1 {offsets = [0, 0], sizes = [128, 1], strides = [1, 1]} : vector<128x4xf32> to vector<128x1xf32>
    %6 = vector.extract_strided_slice %0 {offsets = [0, 0], sizes = [1, 128], strides = [1, 1]} : vector<4x128xf32> to vector<1x128xf32>
    %7 = vector.broadcast %5 : vector<128x1xf32> to vector<128x128xf32>
    %8 = vector.broadcast %6 : vector<1x128xf32> to vector<128x128xf32>
    %9 = arith.mulf %7, %8 : vector<128x128xf32>
    %10 = arith.addf %4, %9 : vector<128x128xf32>
    %11 = vector.extract_strided_slice %1 {offsets = [0, 1], sizes = [128, 1], strides = [1, 1]} : vector<128x4xf32> to vector<128x1xf32>
    %12 = vector.extract_strided_slice %0 {offsets = [1, 0], sizes = [1, 128], strides = [1, 1]} : vector<4x128xf32> to vector<1x128xf32>
    %13 = vector.broadcast %11 : vector<128x1xf32> to vector<128x128xf32>
    %14 = vector.broadcast %12 : vector<1x128xf32> to vector<128x128xf32>
    %15 = arith.mulf %13, %14 : vector<128x128xf32>
    %16 = arith.addf %10, %15 : vector<128x128xf32>
    %17 = vector.extract_strided_slice %1 {offsets = [0, 2], sizes = [128, 1], strides = [1, 1]} : vector<128x4xf32> to vector<128x1xf32>
    %18 = vector.extract_strided_slice %0 {offsets = [2, 0], sizes = [1, 128], strides = [1, 1]} : vector<4x128xf32> to vector<1x128xf32>
    %19 = vector.broadcast %17 : vector<128x1xf32> to vector<128x128xf32>
    %20 = vector.broadcast %18 : vector<1x128xf32> to vector<128x128xf32>
    %21 = arith.mulf %19, %20 : vector<128x128xf32>
    %22 = arith.addf %16, %21 : vector<128x128xf32>
    %23 = vector.extract_strided_slice %1 {offsets = [0, 3], sizes = [128, 1], strides = [1, 1]} : vector<128x4xf32> to vector<128x1xf32>
    %24 = vector.extract_strided_slice %0 {offsets = [3, 0], sizes = [1, 128], strides = [1, 1]} : vector<4x128xf32> to vector<1x128xf32>
    %25 = vector.broadcast %23 : vector<128x1xf32> to vector<128x128xf32>
    %26 = vector.broadcast %24 : vector<1x128xf32> to vector<128x128xf32>
    %27 = arith.mulf %25, %26 : vector<128x128xf32>
    %28 = arith.addf %22, %27 : vector<128x128xf32>
    %cst = arith.constant 0.000000e+00 : f32
    %29 = vector.broadcast %cst : f32 to vector<128x128xf32>
    %30 = arith.maximumf %28, %29 : vector<128x128xf32>
    %c0_5 = arith.constant 0 : index
    %c0_6 = arith.constant 0 : index
    %31 = vector.load %arg4[%c0_5, %c0_6] : memref<128x128xf32, #tpu.memory_space<vmem>>, vector<128x128xf32>
    %cst_7 = arith.constant dense<0.000000e+00> : vector<128x128xf32>
    %32 = tpu.matmul %31, %30, %cst_7 {dimension_numbers = #tpu.dot_dimension_numbers<[1], [0], [0], [1], [0, 0, 1, 1], [], []>} : vector<128x128xf32>, vector<128x128xf32>, vector<128x128xf32> -> vector<128x128xf32>
    %c0_8 = arith.constant 0 : index
    %c0_9 = arith.constant 0 : index
    %33 = vector.load %arg5[%c0_8, %c0_9] : memref<128x1xf32, #tpu.memory_space<vmem>>, vector<128x1xf32>
    %34 = vector.broadcast %33 : vector<128x1xf32> to vector<128x128xf32>
    %35 = arith.addf %32, %34 : vector<128x128xf32>
    %cst_10 = arith.constant 0.000000e+00 : f32
    %36 = vector.broadcast %cst_10 : f32 to vector<128x128xf32>
    %37 = arith.maximumf %35, %36 : vector<128x128xf32>
    %c0_11 = arith.constant 0 : index
    %c0_12 = arith.constant 0 : index
    %38 = vector.load %arg6[%c0_11, %c0_12] : memref<8x128xf32, #tpu.memory_space<vmem>>, vector<8x128xf32>
    %cst_13 = arith.constant dense<0.000000e+00> : vector<8x128xf32>
    %39 = tpu.matmul %38, %37, %cst_13 {dimension_numbers = #tpu.dot_dimension_numbers<[1], [0], [0], [1], [0, 0, 1, 1], [], []>} : vector<8x128xf32>, vector<128x128xf32>, vector<8x128xf32> -> vector<8x128xf32>
    %c0_14 = arith.constant 0 : index
    %c0_15 = arith.constant 0 : index
    %40 = vector.load %arg7[%c0_14, %c0_15] : memref<8x1xf32, #tpu.memory_space<vmem>>, vector<8x1xf32>
    %41 = vector.broadcast %40 : vector<8x1xf32> to vector<8x128xf32>
    %42 = arith.addf %39, %41 : vector<8x128xf32>
    %c0_16 = arith.constant 0 : index
    %c0_17 = arith.constant 0 : index
    %43 = vector.load %arg8[%c0_16, %c0_17] : memref<8x128xf32, #tpu.memory_space<vmem>>, vector<8x128xf32>
    tpu.vector_store %arg8[%c0_16, %c0_17], %42 {strides = array<i32>} : memref<8x128xf32, #tpu.memory_space<vmem>>, vector<8x128xf32>,
    return
  }
  func.func @transform_0(%arg0: i32) -> (i32, i32) {
    %c0_i32 = arith.constant 0 : i32
    %c0_i32_0 = arith.constant 0 : i32
    return %c0_i32, %arg0 : i32, i32
  }
  func.func @transform_1(%arg0: i32) -> (i32, i32) {
    %c0_i32 = arith.constant 0 : i32
    %c0_i32_0 = arith.constant 0 : i32
    %c0_i32_1 = arith.constant 0 : i32
    return %c0_i32, %c0_i32_0 : i32, i32
  }
  func.func @transform_2(%arg0: i32) -> (i32, i32) {
    %c0_i32 = arith.constant 0 : i32
    %c0_i32_0 = arith.constant 0 : i32
    %c0_i32_1 = arith.constant 0 : i32
    return %c0_i32, %c0_i32_0 : i32, i32
  }
  func.func @transform_3(%arg0: i32) -> (i32, i32) {
    %c0_i32 = arith.constant 0 : i32
    %c0_i32_0 = arith.constant 0 : i32
    %c0_i32_1 = arith.constant 0 : i32
    return %c0_i32, %c0_i32_0 : i32, i32
  }
  func.func @transform_4(%arg0: i32) -> (i32, i32) {
    %c0_i32 = arith.constant 0 : i32
    %c0_i32_0 = arith.constant 0 : i32
    %c0_i32_1 = arith.constant 0 : i32
    return %c0_i32, %c0_i32_0 : i32, i32
  }
  func.func @transform_5(%arg0: i32) -> (i32, i32) {
    %c0_i32 = arith.constant 0 : i32
    %c0_i32_0 = arith.constant 0 : i32
    %c0_i32_1 = arith.constant 0 : i32
    return %c0_i32, %c0_i32_0 : i32, i32
  }
  func.func @transform_6(%arg0: i32) -> (i32, i32) {
    %c0_i32 = arith.constant 0 : i32
    %c0_i32_0 = arith.constant 0 : i32
    %c0_i32_1 = arith.constant 0 : i32
    return %c0_i32, %c0_i32_0 : i32, i32
  }
  func.func @transform_7(%arg0: i32) -> (i32, i32) {
    %c0_i32 = arith.constant 0 : i32
    %c0_i32_0 = arith.constant 0 : i32
    return %c0_i32, %arg0 : i32, i32
  }
}

</mosaic_0001>

<bundles_post_ra>
// kernel: q_forward.1
= control target key start
LH: loop header
LB: loop body
LE: loop exit
PB: predicated region body
PF: predicated region fallthrough
CT: control target
= control target key end

     0   :  { %v1127_v0 = vmov 3   ;;  %v1128_v1 = vmov 0   ;;  %v1129_v5 = vmov 1   ;;  %v1130_v9 = vmov 2   ;;  %s1668_s1 = inlined_call_operand.vmem [shape: f32[128,4], index: 1, kind: input, shape index: {}]   ;;  %s1669_s2 = inlined_call_operand.vmem [shape: f32[128,1], index: 2, kind: input, shape index: {}]   ;;  %s1670_s0 = inlined_call_operand.vmem [shape: f32[4,128], index: 0, kind: input, shape index: {}]   ;;  %s1671_s3 = inlined_call_operand.vmem [shape: f32[128,128], index: 3, kind: input, shape index: {}]   ;;  %s1672_s4 = inlined_call_operand.vmem [shape: f32[128,1], index: 4, kind: input, shape index: {}]   ;;  %s1673_s6 = inlined_call_operand.vmem [shape: f32[8,1], index: 6, kind: input, shape index: {}]   ;;  %s1674_s5 = inlined_call_operand.vmem [shape: f32[8,128], index: 5, kind: input, shape index: {}]   ;;  %s1675_s7 = inlined_call_operand.vmem [shape: f32[8,128], index: 7, kind: output, shape index: {}]  }
   0x1   :  { %1079 = vset.pattern.permute.xlu0 %v1127_v0  ;;  %1072 = vset.pattern.permute.xlu1 %v1128_v1  ;;  %v42_v2 = vld [vmem:[%s1668_s1 + $0x78] sm:$0xff]  ;;  %v41_v3 = vld [vmem:[%s1668_s1 + $0x70] sm:$0xff]  ;;  %v1184_v4 = vld [vmem:[%s1668_s1 + $0x60] sm:$0xff]  ;;  %v219_v41 = vlaneseq  ;;  %vm1132_vm0 = vmmov 0  }
   0x2   :  { %516 = vperm.xlu0 %1079, %v42_v2   ;;  %211 = vperm.xlu1 %1072, %v41_v3   ;;  %v1191_v6 = vld [vmem:[%s1668_s1 + $0x48] sm:$0xff]  ;;  %v1201_v8 = vld [vmem:[%s1668_s1 + $0x30] sm:$0xff]  ;;  %v1218_v11 = vld [vmem:[%s1668_s1 + $0x18] sm:$0xff] }
   0x3   :  { %v40_v7 = vld [vmem:[%s1668_s1 + $0x68] sm:$0xff]  ;;  %v55_v12 = vld [vmem:[%s1669_s2 + $0x60] sm:$0xff]  ;;  %v38_v13 = vld [vmem:[%s1668_s1 + $0x58] sm:$0xff]  ;;  %v220_v45 = vshrl.u32 %v219_v41, 7 }
   0x4   :  { %v56_v10 = vld [vmem:[%s1669_s2 + $0x68] sm:$0xff]  ;;  %v58_v14 = vld [vmem:[%s1669_s2 + $0x78] sm:$0xff]  ;;  %v57_v15 = vld [vmem:[%s1669_s2 + $0x70] sm:$0xff] }
   0x5   :  { %v37_v16 = vld [vmem:[%s1668_s1 + $0x50] sm:$0xff]  ;;  %v54_v17 = vld [vmem:[%s1669_s2 + $0x58] sm:$0xff]  ;;  %v51_v18 = vld [vmem:[%s1669_s2 + $0x40] sm:$0xff]  ;;  %v221_v48 = vsub.s32 0, %v220_v45  ;;  %v321_v51 = vsub.s32 1, %v220_v45  ;;  %v521_v54 = vsub.s32 3, %v220_v45 }
   0x6   :  { %1073 = vset.pattern.permute.xlu1 %v1129_v5  ;;  %504 = vperm.xlu0 %1079, %v1184_v4   ;;  %v53_v19 = vld [vmem:[%s1669_s2 + $0x50] sm:$0xff]  ;;  %v48_v20 = vld [vmem:[%s1669_s2 + $0x28] sm:$0xff]  ;;  %v1268_v22 = vld [vmem:[%s1668_s1] sm:$0xff]  ;;  %v421_v55 = vsub.s32 2, %v220_v45 }
   0x7   :  { %316 = vperm.xlu1 %1073, %v42_v2   ;;  %v45_v21 = vld [vmem:[%s1669_s2 + $0x10] sm:$0xff]  ;;  %v52_v23 = vld [vmem:[%s1669_s2 + $0x48] sm:$0xff]  ;;  %v35_v24 = vld [vmem:[%s1668_s1 + $0x40] sm:$0xff] }
   0x8   :  { %v1288_v25 = vld [vmem:[%s1668_s1 + $0x38] sm:$0xff]  ;;  %v1293_v26 = vld [vmem:[%s1668_s1 + $0x8] sm:$0xff]  ;;  %v49_v32 = vld [vmem:[%s1669_s2 + $0x30] sm:$0xff] }
   0x9   :  { %v50_v27 = vld [vmem:[%s1669_s2 + $0x38] sm:$0xff]  ;;  %v1324_v35 = vld [vmem:[%s1668_s1 + $0x28] sm:$0xff]  ;;  %v1343_v44 = vld [vmem:[%s1668_s1 + $0x20] sm:$0xff] }
   0xa   :  { %492 = vperm.xlu0 %1079, %v1191_v6   ;;  %v26_v50 = vld [vmem:[%s1670_s0] sm:$0xf]  ;;  %v1401_v41 = vld [vmem:[%s1668_s1 + $0x10] sm:$0xff] }
   0xb   :  { %1074 = vset.pattern.permute.xlu1 %v1128_v1  ;;  %v1358_v53 = vrot.slane %v26_v50, %v221_v48  ;;  %v1361_v57 = vrot.slane %v26_v50, %v321_v51  ;;  %v1367_v60 = vrot.slane %v26_v50, %v521_v54  ;;  %v1369_v61 = vrot.slane %v26_v50, %v421_v55  ;;  %v47_v62 = vld [vmem:[%s1669_s2 + $0x20] sm:$0xff] }
   0xc   :  { %206 = vperm.xlu1 %1074, %v40_v7  }
   0xe   :  { %480 = vperm.xlu0 %1079, %v1201_v8  }
  0x10   :  { %1075 = vset.pattern.permute.xlu1 %v1130_v9 }
  0x11   :  { %416 = vperm.xlu1 %1075, %v42_v2  }
  0x12   :  { %1107 = vset.pattern.permute.xlu0 %v1129_v5 }
  0x13   :  { %312 = vperm.xlu0 %1107, %v41_v3  }
  0x15   :  { %1076 = vset.pattern.permute.xlu1 %v1128_v1 }
  0x16   :  { %126 = vperm.xlu1 %1076, %v56_v10  }
  0x17   :  { %304 = vperm.xlu0 %1107, %v1184_v4  }
  0x1a   :  { %1077 = vset.pattern.permute.xlu1 %v1129_v5 }
  0x1b   :  { %308 = vperm.xlu1 %1077, %v40_v7   ;;  %292 = vperm.xlu0 %1107, %v1191_v6  }
  0x1f   :  { %1078 = vset.pattern.permute.xlu1 %v1130_v9  ;;  %280 = vperm.xlu0 %1107, %v1201_v8  }
  0x20   :  { %412 = vperm.xlu1 %1078, %v41_v3  }
  0x23   :  { %268 = vperm.xlu0 %1107, %v1218_v11  }
  0x24   :  { %1080 = vset.pattern.permute.xlu1 %v1128_v1 }
  0x25   :  { %121 = vperm.xlu1 %1080, %v55_v12  }
  0x27   :  { %1109 = vset.pattern.permute.xlu0 %v1128_v1 }
  0x28   :  { %216 = vperm.xlu0 %1109, %v42_v2  }
  0x29   :  { %196 = vperm.xlu1 %1080, %v38_v13  }
  0x2c   :  { %136 = vperm.xlu0 %1109, %v58_v14  }
  0x2d   :  { %1081 = vset.pattern.permute.xlu1 %v1130_v9 }
  0x2e   :  { %408 = vperm.xlu1 %1081, %v40_v7  }
  0x30   :  { %131 = vperm.xlu0 %1109, %v57_v15  }
  0x32   :  { %1082 = vset.pattern.permute.xlu1 %v1127_v0 }
  0x33   :  { %512 = vperm.xlu1 %1082, %v41_v3  }
  0x34   :  { %201 = vperm.xlu0 %1109, %v1184_v4  }
  0x37   :  { %1083 = vset.pattern.permute.xlu1 %v1128_v1 }
  0x38   :  { %191 = vperm.xlu1 %1083, %v37_v16   ;;  %116 = vperm.xlu0 %1109, %v54_v17  }
  0x3c   :  { %1084 = vset.pattern.permute.xlu1 %v1129_v5  ;;  %186 = vperm.xlu0 %1109, %v1191_v6  }
  0x3d   :  { %300 = vperm.xlu1 %1084, %v38_v13  }
  0x40   :  { %101 = vperm.xlu0 %1109, %v51_v18  }
  0x41   :  { %1085 = vset.pattern.permute.xlu1 %v1127_v0 }
  0x42   :  { %508 = vperm.xlu1 %1085, %v40_v7  }
  0x44   :  { %171 = vperm.xlu0 %1109, %v1201_v8  }
  0x46   :  { %1086 = vset.pattern.permute.xlu1 %v1128_v1 }
  0x47   :  { %111 = vperm.xlu1 %1086, %v53_v19  }
  0x48   :  { %86 = vperm.xlu0 %1109, %v48_v20  }
  0x4b   :  { %1087 = vset.pattern.permute.xlu1 %v1129_v5 }
  0x4c   :  { %296 = vperm.xlu1 %1087, %v37_v16   ;;  %156 = vperm.xlu0 %1109, %v1218_v11  }
  0x50   :  { %1088 = vset.pattern.permute.xlu1 %v1130_v9  ;;  %71 = vperm.xlu0 %1109, %v45_v21  }
  0x51   :  { %400 = vperm.xlu1 %1088, %v38_v13  }
  0x54   :  { %141 = vperm.xlu0 %1109, %v1268_v22  }
  0x55   :  { %1089 = vset.pattern.permute.xlu1 %v1128_v1 }
  0x56   :  { %106 = vperm.xlu1 %1089, %v52_v23  }
  0x58   :  { %1116 = vset.pattern.permute.xlu0 %v1130_v9 }
  0x59   :  { %404 = vperm.xlu0 %1116, %v1184_v4  }
  0x5a   :  { %181 = vperm.xlu1 %1089, %v35_v24  }
  0x5d   :  { %392 = vperm.xlu0 %1116, %v1191_v6  }
  0x5e   :  { %1090 = vset.pattern.permute.xlu1 %v1130_v9 }
  0x5f   :  { %396 = vperm.xlu1 %1090, %v37_v16  }
  0x61   :  { %380 = vperm.xlu0 %1116, %v1201_v8  }
  0x63   :  { %1091 = vset.pattern.permute.xlu1 %v1127_v0 }
  0x64   :  { %500 = vperm.xlu1 %1091, %v38_v13  }
  0x65   :  { %368 = vperm.xlu0 %1116, %v1218_v11  }
  0x68   :  { %1092 = vset.pattern.permute.xlu1 %v1128_v1 }
  0x69   :  { %176 = vperm.xlu1 %1092, %v1288_v25   ;;  %360 = vperm.xlu0 %1116, %v1293_v26  }
  0x6d   :  { %1093 = vset.pattern.permute.xlu1 %v1129_v5  ;;  %1121 = vset.pattern.permute.xlu0 %v1127_v0 }
  0x6e   :  { %288 = vperm.xlu1 %1093, %v35_v24   ;;  %468 = vperm.xlu0 %1121, %v1218_v11  }
  0x72   :  { %1094 = vset.pattern.permute.xlu1 %v1127_v0  ;;  %460 = vperm.xlu0 %1121, %v1293_v26  }
  0x73   :  { %496 = vperm.xlu1 %1094, %v37_v16  }
  0x76   :  { %1126 = vset.pattern.permute.xlu0 %v1128_v1 }
  0x77   :  { %1095 = vset.pattern.permute.xlu1 %v1128_v1 }
  0x78   :  { %96 = vperm.xlu1 %1095, %v50_v27  }
  0x7c   :  { %1096 = vset.pattern.permute.xlu1 %v1129_v5 }
  0x7d   :  { %v212_v28 = vpop.permute.xlu1 %211  ;;  %284 = vperm.xlu1 %1096, %v1288_v25   ;;  %v517_v29 = vpop.permute.xlu0 %516 }
  0x7e   :  { %v237_v4 = vmul.f32 %v1358_v53, %v212_v28  ;;  %v538_v7 = vmul.f32 %v1367_v60, %v517_v29  ;;  %v46_v29 = vld [vmem:[%s1669_s2 + $0x18] sm:$0xff] }
  0x81   :  { %1097 = vset.pattern.permute.xlu1 %v1130_v9  ;;  %v1311_v30 = vpop.permute.xlu0 %504 }
  0x82   :  { %v317_v31 = vpop.permute.xlu1 %316  ;;  %388 = vperm.xlu1 %1097, %v35_v24  }
  0x83   :  { %v338_v2 = vmul.f32 %v1361_v57, %v317_v31 }
  0x85   :  { %v1316_v33 = vpop.permute.xlu0 %492 }
  0x86   :  { %1098 = vset.pattern.permute.xlu1 %v1128_v1 }
  0x87   :  { %v1319_v34 = vpop.permute.xlu1 %206  ;;  %91 = vperm.xlu1 %1098, %v49_v32  }
  0x88   :  { %v236_v32 = vmul.f32 %v1358_v53, %v1319_v34 }
  0x89   :  { %v1326_v36 = vpop.permute.xlu0 %480 }
  0x8b   :  { %166 = vperm.xlu1 %1098, %v1324_v35  }
  0x8c   :  { %v417_v37 = vpop.permute.xlu1 %416 }
  0x8d   :  { %v438_v8 = vmul.f32 %v1369_v61, %v417_v37 }
  0x8e   :  { %v313_v38 = vpop.permute.xlu0 %312 }
  0x8f   :  { %1099 = vset.pattern.permute.xlu1 %v1130_v9  ;;  %v337_v10 = vmul.f32 %v1361_v57, %v313_v38 }
  0x90   :  { %384 = vperm.xlu1 %1099, %v1288_v25  }
  0x91   :  { %v1331_v39 = vpop.permute.xlu1 %126 }
  0x92   :  { %v1333_v40 = vpop.permute.xlu0 %304  ;;  %v252_v45 = vadd.f32 %v236_v32, %v1331_v39 }
  0x94   :  { %1100 = vset.pattern.permute.xlu1 %v1127_v0 }
  0x95   :  { %488 = vperm.xlu1 %1100, %v35_v24  }
  0x96   :  { %v1336_v42 = vpop.permute.xlu1 %308  ;;  %v1338_v43 = vpop.permute.xlu0 %292 }
  0x97   :  { %v336_v37 = vmul.f32 %v1361_v57, %v1336_v42 }
  0x99   :  { %1101 = vset.pattern.permute.xlu1 %v1128_v1  ;;  %v352_v50 = vadd.f32 %v336_v37, %v252_v45 }
  0x9a   :  { %161 = vperm.xlu1 %1101, %v1343_v44   ;;  %v1347_v46 = vpop.permute.xlu0 %280 }
  0x9b   :  { %v413_v47 = vpop.permute.xlu1 %412 }
  0x9c   :  { %v437_v15 = vmul.f32 %v1369_v61, %v413_v47 }
  0x9e   :  { %1102 = vset.pattern.permute.xlu1 %v1129_v5  ;;  %v1350_v49 = vpop.permute.xlu0 %268 }
  0x9f   :  { %276 = vperm.xlu1 %1102, %v1324_v35  }
  0xa0   :  { %v1356_v52 = vpop.permute.xlu1 %121 }
  0xa3   :  { %1103 = vset.pattern.permute.xlu1 %v1127_v0  ;;  %v217_v56 = vpop.permute.xlu0 %216 }
  0xa4   :  { %v238_v58 = vmul.f32 %v1358_v53, %v217_v56  ;;  %v1364_v59 = vpop.permute.xlu1 %196  ;;  %484 = vperm.xlu1 %1103, %v1288_v25  }
  0xa7   :  { %v137_v63 = vpop.permute.xlu0 %136 }
  0xa8   :  { %v254_v3 = vadd.f32 %v238_v58, %v137_v63  ;;  %1104 = vset.pattern.permute.xlu1 %v1128_v1 }
  0xa9   :  { %v409_v6 = vpop.permute.xlu1 %408  ;;  %81 = vperm.xlu1 %1104, %v47_v62  }
  0xaa   :  { %v354_v11 = vadd.f32 %v338_v2, %v254_v3  ;;  %v436_v47 = vmul.f32 %v1369_v61, %v409_v6 }
  0xab   :  { %v132_v12 = vpop.permute.xlu0 %131 }
  0xac   :  { %v253_v13 = vadd.f32 %v237_v4, %v132_v12  ;;  %v454_v14 = vadd.f32 %v438_v8, %v354_v11  ;;  %v452_v51 = vadd.f32 %v436_v47, %v352_v50  ;;  %v535_v11 = vmul.f32 %v1367_v60, %v1311_v30 }
  0xad   :  { %1105 = vset.pattern.permute.xlu1 %v1129_v5 }
  0xae   :  { %v353_v16 = vadd.f32 %v337_v10, %v253_v13  ;;  %v513_v17 = vpop.permute.xlu1 %512  ;;  %272 = vperm.xlu1 %1105, %v1343_v44   ;;  %v554_v18 = vadd.f32 %v538_v7, %v454_v14  ;;  %v332_v13 = vmul.f32 %v1361_v57, %v1338_v43 }
  0xaf   :  { %v537_v19 = vmul.f32 %v1367_v60, %v513_v17  ;;  %v202_v20 = vpop.permute.xlu0 %201 }
  0xb0   :  { %v453_v21 = vadd.f32 %v437_v15, %v353_v16  ;;  %v570_v23 = vmax.f32 %v554_v18, 0.0  ;;  %v235_v4 = vmul.f32 %v1358_v53, %v202_v20  ;;  %v532_v18 = vmul.f32 %v1367_v60, %v1316_v33 }
  0xb2   :  { %v553_v24 = vadd.f32 %v537_v19, %v453_v21  ;;  %1106 = vset.pattern.permute.xlu1 %v1130_v9  ;;  %975 = vmatprep.subr.mxu0 %v570_v23  ;;  %v251_v7 = vadd.f32 %v235_v4, %v1356_v52  ;;  %v44_v52 = vld [vmem:[%s1669_s2 + $0x8] sm:$0xff]  ;;  %v234_v21 = vmul.f32 %v1358_v53, %v1364_v59 }
  0xb3   :  { %v1385_v25 = vpop.permute.xlu1 %191  ;;  %376 = vperm.xlu1 %1106, %v1324_v35   ;;  %v1388_v27 = vpop.permute.xlu0 %116  ;;  %976 = vmatpush3.msra.mxu0 %v570_v23 }
  0xb4   :  { %v569_v28 = vmax.f32 %v553_v24, 0.0 }
  0xb6   :  { %977 = vmatprep.subr.mxu0 %v569_v28 }
  0xb7   :  { %1108 = vset.pattern.permute.xlu1 %v1128_v1  ;;  %978 = vmatpush3.msra.mxu0 %v569_v28  ;;  %v187_v31 = vpop.permute.xlu0 %186 }
  0xb8   :  { %v301_v38 = vpop.permute.xlu1 %300  ;;  %76 = vperm.xlu1 %1108, %v46_v29   ;;  %v232_v8 = vmul.f32 %v1358_v53, %v187_v31  ;;  %v250_v29 = vadd.f32 %v234_v21, %v1388_v27  ;;  %v43_v27 = vld [vmem:[%s1669_s2] sm:$0xff] }
  0xbb   :  { %v1405_v48 = vpop.permute.xlu0 %101 }
  0xbc   :  { %151 = vperm.xlu1 %1108, %v1401_v41  }
  0xbd   :  { %v509_v34 = vpop.permute.xlu1 %508 }
  0xbe   :  { %v536_v42 = vmul.f32 %v1367_v60, %v509_v34 }
  0xbf   :  { %v1409_v54 = vpop.permute.xlu0 %171 }
  0xc0   :  { %v552_v55 = vadd.f32 %v536_v42, %v452_v51  ;;  %1110 = vset.pattern.permute.xlu1 %v1130_v9 }
  0xc1   :  { %372 = vperm.xlu1 %1110, %v1343_v44  }
  0xc2   :  { %v568_v56 = vmax.f32 %v552_v55, 0.0  ;;  %v1413_v39 = vpop.permute.xlu1 %111 }
  0xc3   :  { %v1415_v58 = vpop.permute.xlu0 %86 }
  0xc4   :  { %979 = vmatprep.subr.mxu0 %v568_v56 }
  0xc5   :  { %1111 = vset.pattern.permute.xlu1 %v1127_v0  ;;  %980 = vmatpush3.msra.mxu0 %v568_v56 }
  0xc6   :  { %476 = vperm.xlu1 %1111, %v1324_v35   ;;  %v335_v35 = vmul.f32 %v1361_v57, %v1333_v40 }
  0xc7   :  { %v297_v62 = vpop.permute.xlu1 %296  ;;  %v1419_v63 = vpop.permute.xlu0 %156 }
  0xc8   :  { %v351_v15 = vadd.f32 %v335_v35, %v251_v7  ;;  %v333_v34 = vmul.f32 %v1361_v57, %v297_v62 }
  0xca   :  { %1112 = vset.pattern.permute.xlu1 %v1128_v1 }
  0xcb   :  { %146 = vperm.xlu1 %1112, %v1293_v26   ;;  %v1423_v2 = vpop.permute.xlu0 %71 }
  0xcc   :  { %v401_v3 = vpop.permute.xlu1 %400 }
  0xcd   :  { %v434_v31 = vmul.f32 %v1369_v61, %v401_v3 }
  0xcf   :  { %1113 = vset.pattern.permute.xlu1 %v1129_v5  ;;  %v1427_v6 = vpop.permute.xlu0 %141 }
  0xd0   :  { %264 = vperm.xlu1 %1113, %v1401_v41  }
  0xd1   :  { %v107_v10 = vpop.permute.xlu1 %106 }
  0xd2   :  { %v248_v14 = vadd.f32 %v232_v8, %v107_v10  ;;  %v229_v10 = vmul.f32 %v1358_v53, %v1409_v54 }
  0xd4   :  { %1114 = vset.pattern.permute.xlu1 %v1127_v0  ;;  %v405_v12 = vpop.permute.xlu0 %404  ;;  %v348_v19 = vadd.f32 %v332_v13, %v248_v14 }
  0xd5   :  { %v435_v16 = vmul.f32 %v1369_v61, %v405_v12  ;;  %v1440_v17 = vpop.permute.xlu1 %181  ;;  %472 = vperm.xlu1 %1114, %v1343_v44   ;;  %v334_v44 = vmul.f32 %v1361_v57, %v301_v38 }
  0xd7   :  { %v451_v40 = vadd.f32 %v435_v16, %v351_v15  ;;  %v350_v32 = vadd.f32 %v334_v44, %v250_v29  ;;  %v231_v16 = vmul.f32 %v1358_v53, %v1440_v17 }
  0xd8   :  { %v393_v30 = vpop.permute.xlu0 %392 }
  0xd9   :  { %v432_v43 = vmul.f32 %v1369_v61, %v393_v30  ;;  %1115 = vset.pattern.permute.xlu1 %v1128_v1  ;;  %v551_v20 = vadd.f32 %v535_v11, %v451_v40  ;;  %v450_v59 = vadd.f32 %v434_v31, %v350_v32  ;;  %v602_v31 = vld [vmem:[%s1672_s4 + $0x78] sm:$0xff] }
  0xda   :  { %v397_v23 = vpop.permute.xlu1 %396  ;;  %66 = vperm.xlu1 %1115, %v44_v52  }
  0xdb   :  { %v448_v24 = vadd.f32 %v432_v43, %v348_v19  ;;  %v567_v28 = vmax.f32 %v551_v20, 0.0  ;;  %v433_v55 = vmul.f32 %v1369_v61, %v397_v23 }
  0xdc   :  { %v381_v11 = vpop.permute.xlu0 %380 }
  0xdd   :  { %981 = vmatprep.subr.mxu0 %v567_v28  ;;  %v548_v33 = vadd.f32 %v532_v18, %v448_v24 }
  0xde   :  { %1117 = vset.pattern.permute.xlu1 %v1129_v5  ;;  %982 = vmatpush3.msra.mxu0 %v567_v28 }
  0xdf   :  { %v501_v37 = vpop.permute.xlu1 %500  ;;  %260 = vperm.xlu1 %1117, %v1293_v26   ;;  %v233_v26 = vmul.f32 %v1358_v53, %v1385_v25 }
  0xe0   :  { %v534_v38 = vmul.f32 %v1367_v60, %v501_v37 }
  0xe1   :  { %v249_v42 = vadd.f32 %v233_v26, %v1413_v39  ;;  %v564_v39 = vmax.f32 %v548_v33, 0.0  ;;  %v601_v33 = vld [vmem:[%s1672_s4 + $0x70] sm:$0xff]  ;;  %v599_v26 = vld [vmem:[%s1672_s4 + $0x60] sm:$0xff] }
  0xe2   :  { %v550_v45 = vadd.f32 %v534_v38, %v450_v59  ;;  %675 = vperm.xlu0 %1126, %v601_v33   ;;  %v600_v38 = vld [vmem:[%s1672_s4 + $0x68] sm:$0xff] }
  0xe3   :  { %1118 = vset.pattern.permute.xlu1 %v1130_v9  ;;  %v349_v56 = vadd.f32 %v333_v34, %v249_v42  ;;  %v596_v34 = vld [vmem:[%s1672_s4 + $0x48] sm:$0xff]  ;;  %v597_v42 = vld [vmem:[%s1672_s4 + $0x50] sm:$0xff] }
  0xe4   :  { %v566_v47 = vmax.f32 %v550_v45, 0.0  ;;  %v1459_v50 = vpop.permute.xlu1 %176  ;;  %364 = vperm.xlu1 %1118, %v1401_v41   ;;  %v598_v45 = vld [vmem:[%s1672_s4 + $0x58] sm:$0xff] }
  0xe5   :  { %v449_v4 = vadd.f32 %v433_v55, %v349_v56  ;;  %v230_v17 = vmul.f32 %v1358_v53, %v1459_v50  ;;  %v594_v56 = vld [vmem:[%s1672_s4 + $0x38] sm:$0xff] }
  0xe6   :  { %983 = vmatprep.subr.mxu0 %v566_v47  ;;  %660 = vperm.xlu0 %1126, %v598_v45  }
  0xe7   :  { %984 = vmatpush3.msra.mxu0 %v566_v47 }
  0xe8   :  { %1119 = vset.pattern.permute.xlu1 %v1128_v1 }
  0xe9   :  { %v289_v51 = vpop.permute.xlu1 %288  ;;  %61 = vperm.xlu1 %1119, %v43_v27  }
  0xea   :  { %v331_v52 = vmul.f32 %v1361_v57, %v289_v51  ;;  %650 = vperm.xlu0 %1126, %v596_v34  }
  0xed   :  { %1120 = vset.pattern.permute.xlu1 %v1129_v5 }
  0xee   :  { %v497_v3 = vpop.permute.xlu1 %496  ;;  %256 = vperm.xlu1 %1120, %v1268_v22   ;;  %640 = vperm.xlu0 %1126, %v594_v56  }
  0xef   :  { %v533_v35 = vmul.f32 %v1367_v60, %v497_v3  ;;  %v595_v3 = vld [vmem:[%s1672_s4 + $0x40] sm:$0xff] }
  0xf1   :  { %v549_v7 = vadd.f32 %v533_v35, %v449_v4  ;;  %v592_v4 = vld [vmem:[%s1672_s4 + $0x28] sm:$0xff] }
  0xf2   :  { %1122 = vset.pattern.permute.xlu1 %v1127_v0  ;;  %630 = vperm.xlu0 %1126, %v592_v4  }
  0xf3   :  { %v565_v25 = vmax.f32 %v549_v7, 0.0  ;;  %v97_v62 = vpop.permute.xlu1 %96  ;;  %464 = vperm.xlu1 %1122, %v1401_v41   ;;  %v571_v41 = vld [vmem:[%s1671_s3] sm:$0xff]  ;;  %v593_v7 = vld [vmem:[%s1672_s4 + $0x30] sm:$0xff] }
  0xf4   :  { %1007 = vmatprep.mubr.f32.mxu0 %v571_v41  ;;  %v588_v41 = vld [vmem:[%s1672_s4 + $0x8] sm:$0xff] }
  0xf5   :  { %985 = vmatprep.subr.mxu0 %v565_v25 }
  0xf6   :  { %986 = vmatpush3.msra.mxu0 %v565_v25  ;;  %v590_v25 = vld [vmem:[%s1672_s4 + $0x18] sm:$0xff] }
  0xf7   :  { %1123 = vset.pattern.permute.xlu1 %v1130_v9  ;;  %987 = vmatprep.subr.mxu0 %v564_v39  ;;  %v329_v9 = vmul.f32 %v1361_v57, %v1347_v46 }
  0xf8   :  { %v285_v5 = vpop.permute.xlu1 %284  ;;  %356 = vperm.xlu1 %1123, %v1268_v22   ;;  %988 = vmatpush3.msra.mxu0 %v564_v39 }
  0xf9   :  { %v330_v23 = vmul.f32 %v1361_v57, %v285_v5  ;;  %v326_v5 = vmul.f32 %v1361_v57, %v1350_v49  ;;  %620 = vperm.xlu0 %1126, %v590_v25   ;;  %v845_v49 = vld [vmem:[%s1673_s6] sm:$0xff] }
  0xfc   :  { %1124 = vset.pattern.permute.xlu1 %v1127_v0  ;;  %v429_v0 = vmul.f32 %v1369_v61, %v381_v11 }
  0xfd   :  { %v389_v8 = vpop.permute.xlu1 %388  ;;  %456 = vperm.xlu1 %1124, %v1268_v22   ;;  %v529_v22 = vmul.f32 %v1367_v60, %v1326_v36  ;;  %610 = vperm.xlu0 %1126, %v588_v41  }
  0xfe   :  { %v431_v30 = vmul.f32 %v1369_v61, %v389_v8 }
 0x101   :  { %1125 = vset.pattern.permute.xlu1 %v1128_v1  ;;  %v247_v1 = vadd.f32 %v231_v16, %v1405_v48  ;;  %v246_v48 = vadd.f32 %v230_v17, %v97_v62  ;;  %v226_v62 = vmul.f32 %v1358_v53, %v1419_v63  ;;  %v589_v63 = vld [vmem:[%s1672_s4 + $0x10] sm:$0xff]  ;;  %848 = vperm.xlu0 %1126, %v845_v49  }
 0x102   :  { %v92_v12 = vpop.permute.xlu1 %91  ;;  %680 = vperm.xlu1 %1125, %v602_v31  }
 0x103   :  { %v245_v13 = vadd.f32 %v229_v10, %v92_v12  ;;  %v347_v18 = vadd.f32 %v331_v52, %v247_v1  ;;  %v346_v29 = vadd.f32 %v330_v23, %v246_v48  ;;  %v591_v10 = vld [vmem:[%s1672_s4 + $0x20] sm:$0xff] }
 0x105   :  { %v345_v14 = vadd.f32 %v329_v9, %v245_v13  ;;  %v447_v43 = vadd.f32 %v431_v30, %v347_v18 }
 0x106   :  { %v1491_v54 = vpop.permute.xlu1 %166  ;;  %670 = vperm.xlu1 %1125, %v600_v38  }
 0x107   :  { %v445_v15 = vadd.f32 %v429_v0, %v345_v14  ;;  %v228_v12 = vmul.f32 %v1358_v53, %v1491_v54 }
 0x109   :  { %v545_v40 = vadd.f32 %v529_v22, %v445_v15  ;;  %v587_v22 = vld [vmem:[%s1672_s4] sm:$0xff]  ;;  %v244_v14 = vadd.f32 %v228_v12, %v1415_v58 }
 0x10a   :  { %665 = vperm.xlu1 %1125, %v599_v26  }
 0x10b   :  { %v385_v46 = vpop.permute.xlu1 %384  ;;  %v561_v51 = vmax.f32 %v545_v40, 0.0  ;;  %v369_v40 = vpop.permute.xlu0 %368 }
 0x10c   :  { %v430_v28 = vmul.f32 %v1369_v61, %v385_v46 }
 0x10e   :  { %v446_v37 = vadd.f32 %v430_v28, %v346_v29  ;;  %655 = vperm.xlu1 %1125, %v597_v42  }
 0x10f   :  { %v361_v30 = vpop.permute.xlu0 %360 }
 0x110   :  { %v489_v19 = vpop.permute.xlu1 %488  ;;  %v424_v42 = vmul.f32 %v1369_v61, %v361_v30  ;;  %v580_v30 = vld [vmem:[%s1671_s3 + $0x48] sm:$0xff] }
 0x111   :  { %v531_v36 = vmul.f32 %v1367_v60, %v489_v19 }
 0x112   :  { %645 = vperm.xlu1 %1125, %v595_v3  }
 0x113   :  { %v547_v20 = vadd.f32 %v531_v36, %v447_v43  ;;  %v426_v36 = vmul.f32 %v1369_v61, %v369_v40 }
 0x115   :  { %v563_v21 = vmax.f32 %v547_v20, 0.0  ;;  %v1499_v44 = vpop.permute.xlu1 %161 }
 0x116   :  { %635 = vperm.xlu1 %1125, %v593_v7   ;;  %v227_v43 = vmul.f32 %v1358_v53, %v1499_v44 }
 0x117   :  { %989 = vmatprep.subr.mxu0 %v563_v21 }
 0x118   :  { %990 = vmatpush3.msra.mxu0 %v563_v21  ;;  %v469_v21 = vpop.permute.xlu0 %468 }
 0x119   :  { %v526_v28 = vmul.f32 %v1367_v60, %v469_v21  ;;  %v1131_v21 = vmov 0.0  }
 0x11a   :  { %v277_v24 = vpop.permute.xlu1 %276  ;;  %625 = vperm.xlu1 %1125, %v591_v10   ;;  %1031 = vmatprep.subr.mxu1 %v1131_v21 }
 0x11b   :  { %v328_v13 = vmul.f32 %v1361_v57, %v277_v24  ;;  %1063 = vmatprep.mubr.msk.f32.mxu1 %vm1132_vm0, %v1131_v21 }
 0x11c   :  { %v461_v4 = vpop.permute.xlu0 %460 }
 0x11d   :  { %v344_v16 = vadd.f32 %v328_v13, %v244_v14 }
 0x11e   :  { %615 = vperm.xlu1 %1125, %v589_v63  }
 0x11f   :  { %v485_v32 = vpop.permute.xlu1 %484 }
 0x120   :  { %v530_v59 = vmul.f32 %v1367_v60, %v485_v32 }
 0x122   :  { %v546_v47 = vadd.f32 %v530_v59, %v446_v37  ;;  %605 = vperm.xlu1 %1125, %v587_v22  }
 0x124   :  { %v562_v50 = vmax.f32 %v546_v47, 0.0  ;;  %v82_v27 = vpop.permute.xlu1 %81 }
 0x125   :  { %v243_v17 = vadd.f32 %v227_v43, %v82_v27  ;;  %v583_v43 = vld [vmem:[%s1671_s3 + $0x60] sm:$0xff] }
 0x126   :  { %991 = vmatprep.subr.mxu0 %v562_v50 }
 0x127   :  { %992 = vmatpush3.msra.mxu0 %v562_v50 }
 0x128   :  { %993 = vmatprep.subr.mxu0 %v561_v51 }
 0x129   :  { %v273_v55 = vpop.permute.xlu1 %272  ;;  %994 = vmatpush3.msra.mxu0 %v561_v51 }
 0x12a   :  { %v327_v58 = vmul.f32 %v1361_v57, %v273_v55 }
 0x12c   :  { %v343_v24 = vadd.f32 %v327_v58, %v243_v17  ;;  %v584_v58 = vld [vmem:[%s1671_s3 + $0x68] sm:$0xff] }
 0x12e   :  { %v377_v35 = vpop.permute.xlu1 %376 }
 0x12f   :  { %v428_v15 = vmul.f32 %v1369_v61, %v377_v35 }
 0x131   :  { %v444_v46 = vadd.f32 %v428_v15, %v344_v16 }
 0x133   :  { %v77_v39 = vpop.permute.xlu1 %76 }
 0x134   :  { %v242_v8 = vadd.f32 %v226_v62, %v77_v39  ;;  %v524_v39 = vmul.f32 %v1367_v60, %v461_v4 }
 0x136   :  { %v342_v11 = vadd.f32 %v326_v5, %v242_v8 }
 0x137   :  { %v152_v9 = vpop.permute.xlu1 %151 }
 0x138   :  { %v442_v48 = vadd.f32 %v426_v36, %v342_v11  ;;  %v225_v34 = vmul.f32 %v1358_v53, %v152_v9  ;;  %v223_v9 = vmul.f32 %v1358_v53, %v1427_v6  ;;  %v576_v6 = vld [vmem:[%s1671_s3 + $0x28] sm:$0xff]  ;;  %v585_v36 = vld [vmem:[%s1671_s3 + $0x70] sm:$0xff] }
 0x13a   :  { %v542_v32 = vadd.f32 %v526_v28, %v442_v48  ;;  %v241_v35 = vadd.f32 %v225_v34, %v1423_v2 }
 0x13c   :  { %v373_v0 = vpop.permute.xlu1 %372  ;;  %v558_v38 = vmax.f32 %v542_v32, 0.0 }
 0x13d   :  { %v427_v23 = vmul.f32 %v1369_v61, %v373_v0 }
 0x13f   :  { %v443_v31 = vadd.f32 %v427_v23, %v343_v24 }
 0x141   :  { %v477_v52 = vpop.permute.xlu1 %476 }
 0x142   :  { %v528_v54 = vmul.f32 %v1367_v60, %v477_v52 }
 0x144   :  { %v544_v1 = vadd.f32 %v528_v54, %v444_v46  ;;  %v577_v46 = vld [vmem:[%s1671_s3 + $0x30] sm:$0xff]  ;;  %v578_v54 = vld [vmem:[%s1671_s3 + $0x38] sm:$0xff] }
 0x146   :  { %v560_v18 = vmax.f32 %v544_v1, 0.0  ;;  %v147_v19 = vpop.permute.xlu1 %146  ;;  %v579_v1 = vld [vmem:[%s1671_s3 + $0x40] sm:$0xff] }
 0x147   :  { %v224_v27 = vmul.f32 %v1358_v53, %v147_v19  ;;  %v572_v53 = vld [vmem:[%s1671_s3 + $0x8] sm:$0xff]  ;;  %v582_v19 = vld [vmem:[%s1671_s3 + $0x58] sm:$0xff] }
 0x148   :  { %995 = vmatprep.subr.mxu0 %v560_v18 }
 0x149   :  { %996 = vmatpush3.msra.mxu0 %v560_v18  ;;  %v581_v18 = vld [vmem:[%s1671_s3 + $0x50] sm:$0xff] }
 0x14b   :  { %v265_v20 = vpop.permute.xlu1 %264 }
 0x14c   :  { %v325_v55 = vmul.f32 %v1361_v57, %v265_v20  ;;  %v586_v20 = vld [vmem:[%s1671_s3 + $0x78] sm:$0xff] }
 0x14e   :  { %v341_v25 = vadd.f32 %v325_v55, %v241_v35 }
 0x150   :  { %v473_v29 = vpop.permute.xlu1 %472 }
 0x151   :  { %v527_v33 = vmul.f32 %v1367_v60, %v473_v29 }
 0x153   :  { %v543_v37 = vadd.f32 %v527_v33, %v443_v31 }
 0x155   :  { %v559_v44 = vmax.f32 %v543_v37, 0.0  ;;  %v67_v59 = vpop.permute.xlu1 %66 }
 0x156   :  { %v240_v51 = vadd.f32 %v224_v27, %v67_v59 }
 0x157   :  { %997 = vmatprep.subr.mxu0 %v559_v44 }
 0x158   :  { %998 = vmatpush3.msra.mxu0 %v559_v44 }
 0x159   :  { %999 = vmatprep.subr.mxu0 %v558_v38 }
 0x15a   :  { %v261_v45 = vpop.permute.xlu1 %260  ;;  %1000 = vmatpush3.msra.mxu0 %v558_v38 }
 0x15b   :  { %v324_v26 = vmul.f32 %v1361_v57, %v261_v45 }
 0x15d   :  { %v340_v56 = vadd.f32 %v324_v26, %v240_v51  ;;  %v676_v44 = vpop.permute.xlu0 %675 }
 0x15f   :  { %v365_v47 = vpop.permute.xlu1 %364  ;;  %v440_v62 = vadd.f32 %v424_v42, %v340_v56 }
 0x160   :  { %v425_v7 = vmul.f32 %v1369_v61, %v365_v47 }
 0x161   :  { %v540_v41 = vadd.f32 %v524_v39, %v440_v62 }
 0x162   :  { %v441_v8 = vadd.f32 %v425_v7, %v341_v25 }
 0x163   :  { %v556_v2 = vmax.f32 %v540_v41, 0.0 }
 0x164   :  { %v62_v50 = vpop.permute.xlu1 %61 }
 0x165   :  { %v239_v13 = vadd.f32 %v223_v9, %v62_v50  ;;  %v661_v50 = vpop.permute.xlu0 %660 }
 0x169   :  { %v257_v3 = vpop.permute.xlu1 %256  ;;  %v651_v42 = vpop.permute.xlu0 %650 }
 0x16a   :  { %v323_v63 = vmul.f32 %v1361_v57, %v257_v3  ;;  %v573_v57 = vld [vmem:[%s1671_s3 + $0x10] sm:$0xff] }
 0x16c   :  { %v339_v22 = vadd.f32 %v323_v63, %v239_v13 }
 0x16e   :  { %v465_v5 = vpop.permute.xlu1 %464 }
 0x16f   :  { %v525_v10 = vmul.f32 %v1367_v60, %v465_v5  ;;  %v641_v5 = vpop.permute.xlu0 %640 }
 0x171   :  { %v541_v11 = vadd.f32 %v525_v10, %v441_v8 }
 0x173   :  { %v557_v49 = vmax.f32 %v541_v11, 0.0  ;;  %v357_v12 = vpop.permute.xlu1 %356 }
 0x174   :  { %v423_v0 = vmul.f32 %v1369_v61, %v357_v12  ;;  %v574_v61 = vld [vmem:[%s1671_s3 + $0x18] sm:$0xff]  ;;  %v631_v12 = vpop.permute.xlu0 %630 }
 0x175   :  { %1001 = vmatprep.subr.mxu0 %v557_v49 }
 0x176   :  { %1002 = vmatpush3.msra.mxu0 %v557_v49  ;;  %v439_v15 = vadd.f32 %v423_v0, %v339_v22 }
 0x177   :  { %1003 = vmatprep.subr.mxu0 %v556_v2 }
 0x178   :  { %v457_v14 = vpop.permute.xlu1 %456  ;;  %1004 = vmatpush3.msra.mxu0 %v556_v2 }
 0x179   :  { %v523_v16 = vmul.f32 %v1367_v60, %v457_v14  ;;  %v575_v60 = vld [vmem:[%s1671_s3 + $0x20] sm:$0xff] }
 0x17b   :  { %v539_v40 = vadd.f32 %v523_v16, %v439_v15 }
 0x17d   :  { %v555_v52 = vmax.f32 %v539_v40, 0.0  ;;  %v681_v48 = vpop.permute.xlu1 %680  ;;  %v621_v40 = vpop.permute.xlu0 %620 }
 0x17f   :  { %1005 = vmatprep.subr.mxu0 %v555_v52 }
 0x180   :  { %1006 = vmatpush3.msra.mxu0 %v555_v52 }
 0x181   :  { %1008 = vmatmul.mubr.f32.vlgmr.msra.gmra.mxu0 %v572_v53  ;;  %v671_v33 = vpop.permute.xlu1 %670 }
 0x182   :  { %1010 = vmatprep.mubr.f32.mxu0 %v573_v57 }
 0x185   :  { %1011 = vmatmul.mubr.f32.gmra.mxu0 %v574_v61  ;;  %v666_v38 = vpop.permute.xlu1 %665 }
 0x186   :  { %1013 = vmatprep.mubr.f32.mxu0 %v575_v60 }
 0x189   :  { %1014 = vmatmul.mubr.f32.gmra.mxu0 %v576_v6  ;;  %v656_v26 = vpop.permute.xlu1 %655 }
 0x18a   :  { %1016 = vmatprep.mubr.f32.mxu0 %v577_v46 }
 0x18d   :  { %1017 = vmatmul.mubr.f32.gmra.mxu0 %v578_v54  ;;  %v646_v3 = vpop.permute.xlu1 %645  ;;  %v611_v54 = vpop.permute.xlu0 %610 }
 0x18e   :  { %1019 = vmatprep.mubr.f32.mxu0 %v579_v1 }
 0x191   :  { %1020 = vmatmul.mubr.f32.gmra.mxu0 %v580_v30  ;;  %v636_v41 = vpop.permute.xlu1 %635 }
 0x192   :  { %1022 = vmatprep.mubr.f32.mxu0 %v581_v18 }
 0x195   :  { %1023 = vmatmul.mubr.f32.gmra.mxu0 %v582_v19  ;;  %v626_v0 = vpop.permute.xlu1 %625 }
 0x196   :  { %1025 = vmatprep.mubr.f32.mxu0 %v583_v43 }
 0x199   :  { %1026 = vmatmul.mubr.f32.gmra.mxu0 %v584_v58  ;;  %v616_v57 = vpop.permute.xlu1 %615 }
 0x19a   :  { %1028 = vmatprep.mubr.f32.mxu0 %v585_v36 }
 0x19d   :  { %1029 = vmatmul.mubr.f32.gmra.mxu0 %v586_v20  ;;  %v606_v18 = vpop.permute.xlu1 %605 }
 0x241   :  { %v1635_v17 = vpop.f32.mrf.mxu0 }
 0x242   :  { %v755_v19 = vadd.f32 %v1635_v17, %v611_v54  ;;  %v844_v17 = vld [vmem:[%s1674_s5] sm:$0xff] }
 0x243   :  { %v1637_v23 = vpop.f32.mrf.mxu0 }
 0x244   :  { %v750_v58 = vadd.f32 %v1637_v23, %v606_v18  ;;  %v829_v20 = vmax.f32 %v755_v19, 0.0 }
 0x245   :  { %v1639_v24 = vpop.f32.mrf.mxu0 }
 0x246   :  { %v765_v6 = vadd.f32 %v1639_v24, %v621_v40  ;;  %v828_v24 = vmax.f32 %v750_v58, 0.0 }
 0x247   :  { %v1641_v28 = vpop.f32.mrf.mxu0 }
 0x248   :  { %v760_v1 = vadd.f32 %v1641_v28, %v616_v57  ;;  %v831_v43 = vmax.f32 %v765_v6, 0.0 }
 0x249   :  { %v1015_v29 = vpop.f32.mrf.mxu0 }
 0x24a   :  { %v775_v52 = vadd.f32 %v1015_v29, %v631_v12  ;;  %v830_v36 = vmax.f32 %v760_v1, 0.0 }
 0x24b   :  { %v769_v31 = vpop.f32.mrf.mxu0 }
 0x24c   :  { %v770_v61 = vadd.f32 %v769_v31, %v626_v0  ;;  %v833_v46 = vmax.f32 %v775_v52, 0.0 }
 0x24d   :  { %v1018_v32 = vpop.f32.mrf.mxu0 }
 0x24e   :  { %v785_v22 = vadd.f32 %v1018_v32, %v641_v5  ;;  %v832_v30 = vmax.f32 %v770_v61, 0.0 }
 0x24f   :  { %v779_v37 = vpop.f32.mrf.mxu0 }
 0x250   :  { %v780_v15 = vadd.f32 %v779_v37, %v636_v41  ;;  %v835_v53 = vmax.f32 %v785_v22, 0.0 }
 0x251   :  { %v1021_v59 = vpop.f32.mrf.mxu0 }
 0x252   :  { %v795_v63 = vadd.f32 %v1021_v59, %v651_v42  ;;  %v834_v60 = vmax.f32 %v780_v15, 0.0 }
 0x253   :  { %v789_v45 = vpop.f32.mrf.mxu0 }
 0x254   :  { %v790_v2 = vadd.f32 %v789_v45, %v646_v3  ;;  %v837_v14 = vmax.f32 %v795_v63, 0.0 }
 0x255   :  { %v1024_v47 = vpop.f32.mrf.mxu0 }
 0x256   :  { %v805_v8 = vadd.f32 %v1024_v47, %v661_v50  ;;  %v836_v16 = vmax.f32 %v790_v2, 0.0 }
 0x257   :  { %v799_v27 = vpop.f32.mrf.mxu0 }
 0x258   :  { %v800_v11 = vadd.f32 %v799_v27, %v656_v26  ;;  %v839_v49 = vmax.f32 %v805_v8, 0.0 }
 0x259   :  { %v1027_v34 = vpop.f32.mrf.mxu0 }
 0x25a   :  { %v815_v35 = vadd.f32 %v1027_v34, %v671_v33  ;;  %v838_v13 = vmax.f32 %v800_v11, 0.0 }
 0x25b   :  { %v809_v51 = vpop.f32.mrf.mxu0 }
 0x25c   :  { %v810_v62 = vadd.f32 %v809_v51, %v666_v38  ;;  %v841_v10 = vmax.f32 %v815_v35, 0.0 }
 0x25d   :  { %v1030_v55 = vpop.f32.mrf.mxu0 }
 0x25e   :  { %v825_v56 = vadd.f32 %v1030_v55, %v681_v48  ;;  %v840_v9 = vmax.f32 %v810_v62, 0.0  ;;  %v849_v48 = vpop.permute.xlu0 %848 }
 0x25f   :  { %v819_v4 = vpop.f32.mrf.mxu0 }
 0x260   :  { %v843_v7 = vmax.f32 %v825_v56, 0.0  ;;  %v820_v25 = vadd.f32 %v819_v4, %v676_v44 }
 0x262   :  { %v842_v39 = vmax.f32 %v820_v25, 0.0  ;;  %1032 = vmatpush3.msra.mxu1 %v843_v7 }
 0x263   :  { %1033 = vmatprep.subr.mxu1 %v1131_v21 }
 0x264   :  { %1034 = vmatpush3.msra.mxu1 %v842_v39 }
 0x265   :  { %1035 = vmatprep.subr.mxu1 %v1131_v21 }
 0x266   :  { %1036 = vmatpush3.msra.mxu1 %v841_v10 }
 0x267   :  { %1037 = vmatprep.subr.mxu1 %v1131_v21 }
 0x268   :  { %1038 = vmatpush3.msra.mxu1 %v840_v9 }
 0x269   :  { %1039 = vmatprep.subr.mxu1 %v1131_v21 }
 0x26a   :  { %1040 = vmatpush3.msra.mxu1 %v839_v49 }
 0x26b   :  { %1041 = vmatprep.subr.mxu1 %v1131_v21 }
 0x26c   :  { %1042 = vmatpush3.msra.mxu1 %v838_v13 }
 0x26d   :  { %1043 = vmatprep.subr.mxu1 %v1131_v21 }
 0x26e   :  { %1044 = vmatpush3.msra.mxu1 %v837_v14 }
 0x26f   :  { %1045 = vmatprep.subr.mxu1 %v1131_v21 }
 0x270   :  { %1046 = vmatpush3.msra.mxu1 %v836_v16 }
 0x271   :  { %1047 = vmatprep.subr.mxu1 %v1131_v21 }
 0x272   :  { %1048 = vmatpush3.msra.mxu1 %v835_v53 }
 0x273   :  { %1049 = vmatprep.subr.mxu1 %v1131_v21 }
 0x274   :  { %1050 = vmatpush3.msra.mxu1 %v834_v60 }
 0x275   :  { %1051 = vmatprep.subr.mxu1 %v1131_v21 }
 0x276   :  { %1052 = vmatpush3.msra.mxu1 %v833_v46 }
 0x277   :  { %1053 = vmatprep.subr.mxu1 %v1131_v21 }
 0x278   :  { %1054 = vmatpush3.msra.mxu1 %v832_v30 }
 0x279   :  { %1055 = vmatprep.subr.mxu1 %v1131_v21 }
 0x27a   :  { %1056 = vmatpush3.msra.mxu1 %v831_v43 }
 0x27b   :  { %1057 = vmatprep.subr.mxu1 %v1131_v21 }
 0x27c   :  { %1058 = vmatpush3.msra.mxu1 %v830_v36 }
 0x27d   :  { %1059 = vmatprep.subr.mxu1 %v1131_v21 }
 0x27e   :  { %1060 = vmatpush3.msra.mxu1 %v829_v20 }
 0x27f   :  { %1061 = vmatprep.subr.mxu1 %v1131_v21 }
 0x280   :  { %1062 = vmatpush3.msra.mxu1 %v828_v24 }
 0x281   :  { %1064 = vmatmul.mubr.f32.vlgmr.msra.gmra.mxu1 %v844_v17 }
 0x341   :  { %v917_v23 = vpop.f32.mrf.mxu1 }
 0x342   :  { %v918_v28 = vadd.f32 %v917_v23, %v849_v48 }
 0x343   :  { %v1065_v29 = vpop.f32.mrf.mxu1 }
 0x344   :  { %921 = vst [vmem:[%s1675_s7] sm:$0xff] %v918_v28 }

</bundles_post_ra>
